<compile_context>
chip_gen: v7x
topology: tpu7x:2x2x1
jax: 0.10.0
libtpu: 0.0.40
codegen_flags: <defaults>
</compile_context>

<pallas_src>
import functools
import math

import jax
import jax.numpy as jnp
from jax.experimental import pallas as pl
from jax.experimental.pallas import tpu as pltpu


# ----------------------------------------------------------------------------
# Layout helpers
# ----------------------------------------------------------------------------
_LANE = 1024           # target lane width (multiple of 128) -> unmasked vst
_MAX_BLOCK_ROWS = 512  # rows per block (multiple of 8); 512*1024*4B = 2 MiB/block


def _round_up(x, m):
    return (x + m - 1) // m * m


def _as_lane_dense_2d(x):
    """Flatten x and reshape to (rows_padded, lane) with lane % 128 == 0.

    Zero padding keeps both the abs-max reduction and the (sliced-off) quantize
    output exact.  Returns (x2d_f32, n_valid, block_rows)."""
    flat = x.reshape(-1).astype(jnp.float32)
    n = flat.shape[0]
    lane = min(_LANE, _round_up(n, 128))
    rows = pl.cdiv(n, lane)
    block_rows = min(_MAX_BLOCK_ROWS, _round_up(rows, 8))
    rows_p = _round_up(rows, block_rows)
    total = rows_p * lane
    if total != n:
        flat = jnp.pad(flat, (0, total - n), constant_values=0.0)
    return flat.reshape(rows_p, lane), n, block_rows


# ----------------------------------------------------------------------------
# Kernels
# ----------------------------------------------------------------------------
def _absmax_kernel(x_ref, o_ref):
    # Output block (1, lane) is resident across the (arbitrary) grid axis, so it
    # doubles as the accumulator.  Zero-init on the first step only.
    @pl.when(pl.program_id(0) == 0)
    def _():
        o_ref[...] = jnp.zeros_like(o_ref)

    o_ref[...] = jnp.maximum(
        o_ref[...], jnp.max(jnp.abs(x_ref[...]), axis=0, keepdims=True)
    )


def _quantize_kernel(scale_ref, x_ref, o_ref, *, min_val, max_val):
    delta = scale_ref[0, 0]       # 2 ** (-sf)
    inv_delta = scale_ref[0, 1]   # 2 ** sf  (exact power of two -> exact rescale)
    rounded = jnp.floor(x_ref[...] * inv_delta + 0.5)
    o_ref[...] = jnp.clip(rounded, min_val, max_val) * delta


def _sign_minus_one_kernel(x_ref, o_ref):
    o_ref[...] = jnp.sign(x_ref[...]) - 1.0


# ----------------------------------------------------------------------------
# Pallas wrappers
# ----------------------------------------------------------------------------
@jax.jit
def _pallas_abs_max(x):
    x2d, _, block_rows = _as_lane_dense_2d(x)
    rows_p, lane = x2d.shape
    partial = pl.pallas_call(
        _absmax_kernel,
        out_shape=jax.ShapeDtypeStruct((1, lane), jnp.float32),
        grid=(rows_p // block_rows,),
        in_specs=[pl.BlockSpec((block_rows, lane), lambda i: (i, 0))],
        out_specs=pl.BlockSpec((1, lane), lambda i: (0, 0)),
        compiler_params=pltpu.CompilerParams(
            dimension_semantics=("arbitrary",)
        ),
    )(x2d)
    # Final cross-lane reduction of 1 x lane partials is trivial; do it in XLA.
    return jnp.max(partial)


@functools.partial(jax.jit, static_argnames=("bits",))
def _pallas_linear_quantize(x, scale, bits):
    bound = float(2.0 ** (bits - 1))
    x2d, n_valid, block_rows = _as_lane_dense_2d(x)
    rows_p, lane = x2d.shape
    out2d = pl.pallas_call(
        functools.partial(
            _quantize_kernel, min_val=-bound, max_val=bound - 1.0
        ),
        out_shape=jax.ShapeDtypeStruct((rows_p, lane), jnp.float32),
        grid=(rows_p // block_rows,),
        in_specs=[
            pl.BlockSpec(memory_space=pltpu.MemorySpace.SMEM),   # (1, 2) scales
            pl.BlockSpec((block_rows, lane), lambda i: (i, 0)),
        ],
        out_specs=pl.BlockSpec((block_rows, lane), lambda i: (i, 0)),
        compiler_params=pltpu.CompilerParams(
            dimension_semantics=("parallel",)
        ),
    )(scale, x2d)
    return out2d.reshape(-1)[:n_valid].reshape(x.shape).astype(x.dtype)


@jax.jit
def _pallas_sign_minus_one(x):
    x2d, n_valid, block_rows = _as_lane_dense_2d(x)
    rows_p, lane = x2d.shape
    out2d = pl.pallas_call(
        _sign_minus_one_kernel,
        out_shape=jax.ShapeDtypeStruct((rows_p, lane), jnp.float32),
        grid=(rows_p // block_rows,),
        in_specs=[pl.BlockSpec((block_rows, lane), lambda i: (i, 0))],
        out_specs=pl.BlockSpec((block_rows, lane), lambda i: (i, 0)),
        compiler_params=pltpu.CompilerParams(
            dimension_semantics=("parallel",)
        ),
    )(x2d)
    return out2d.reshape(-1)[:n_valid].reshape(x.shape).astype(x.dtype)


# ----------------------------------------------------------------------------
# Module-level functions (mirroring the PyTorch reference)
# ----------------------------------------------------------------------------
def compute_integral_part(x, overflow_rate):
    if overflow_rate == 0.0:
        v = float(_pallas_abs_max(x))
    else:
        # TODO(synk): k-th-largest ("overflow quantile") selection has no clean
        # single-pass Pallas equivalent; fall back to a pure-JAX sort.
        abs_sorted = jnp.sort(jnp.abs(x).reshape(-1))[::-1]
        split_idx = int(overflow_rate * abs_sorted.shape[0])
        v = float(abs_sorted[split_idx])
    return int(math.ceil(math.log2(v + 1e-12)))


def linear_quantize(x, sf, bits):
    assert bits >= 1, bits
    if bits == 1:
        return _pallas_sign_minus_one(x)
    delta = 2.0 ** (-sf)
    scale = jnp.array([[delta, 1.0 / delta]], dtype=jnp.float32)
    return _pallas_linear_quantize(x, scale, bits)


class LinearQuant:
    """JAX/Pallas port of pytorch_playground's LinearQuant module."""

    def __init__(self, name, bits, sf=None, overflow_rate=0.0, counter=10):
        self.name = name
        self._counter = counter
        self.bits = bits
        self.sf = sf
        self.overflow_rate = overflow_rate

    @property
    def counter(self):
        return self._counter

    def __call__(self, x):
        return self.forward(x)

    def forward(self, x):
        if self._counter > 0:
            self._counter -= 1
            sf_new = self.bits - 1 - compute_integral_part(x, self.overflow_rate)
            self.sf = min(self.sf, sf_new) if self.sf is not None else sf_new
            return x
        else:
            return linear_quantize(x, self.sf, self.bits)

    def __repr__(self):
        return "{}(sf={}, bits={}, overflow_rate={:.3f}, counter={})".format(
            self.__class__.__name__, self.sf, self.bits,
            self.overflow_rate, self.counter,
        )


# ----------------------------------------------------------------------------
# Self-test
# ----------------------------------------------------------------------------
if __name__ == "__main__":
    key = jax.random.PRNGKey(0)
    x = 4.0 * jax.random.normal(key, (2, 4, 16, 16), dtype=jnp.float32)

    quant = LinearQuant("act", bits=8, sf=None, overflow_rate=0.0, counter=1)

    # --- Calibration pass (counter > 0): Pallas abs-max reduction, identity output.
    y_cal = quant(x)
    y_cal = jax.block_until_ready(y_cal)
    assert y_cal.shape == x.shape and y_cal.dtype == jnp.float32
    assert bool(jnp.array_equal(y_cal, x))
    assert quant.counter == 0 and quant.sf is not None

    v_ref = float(jnp.max(jnp.abs(x)))
    sf_ref = quant.bits - 1 - int(math.ceil(math.log2(v_ref + 1e-12)))
    assert quant.sf == sf_ref, (quant.sf, sf_ref)

    # --- Quantization pass (counter exhausted): Pallas elementwise quantize kernel.
    y_q = quant(x)
    y_q = jax.block_until_ready(y_q)
    assert y_q.shape == x.shape and y_q.dtype == jnp.float32
    assert bool(jnp.all(jnp.isfinite(y_q)))

    # Pure-JAX reference check.
    delta = 2.0 ** (-quant.sf)
    bound = 2.0 ** (quant.bits - 1)
    ref = jnp.clip(jnp.floor(x / delta + 0.5), -bound, bound - 1) * delta
    assert bool(jnp.allclose(y_q, ref, atol=1e-6)), "quantized output mismatch"

    # --- bits == 1 path (sign(x) - 1) via Pallas.
    y_sign = jax.block_until_ready(linear_quantize(x, 0, 1))
    assert bool(jnp.allclose(y_sign, jnp.sign(x) - 1.0))

    print("KERNEL_OK")
</pallas_src>

<mosaic_0001>
module attributes {stable_mosaic.version = 11 : i64} {
  func.func @_absmax_kernel(%arg0: i32, %arg1: memref<8x1024xf32, #tpu.memory_space<vmem>>, %arg2: memref<1x1024xf32, #tpu.memory_space<vmem>>) attributes {dimension_semantics = [#tpu.dimension_semantics<arbitrary>], iteration_bounds = array<i64: 1>, scalar_prefetch = 0 : i64, scratch_operands = 0 : i64, tpu.core_type = #tpu.core_type<tc>, window_params = [{transform_indices = @transform_0, window_bounds = array<i64: 8, 1024>}, {pipeline_mode = #tpu.pipeline_mode<synchronous>, transform_indices = @transform_1, window_bounds = array<i64: 1, 1024>}]} {
    %c0_i32 = arith.constant 0 : i32
    %0 = arith.cmpi eq, %arg0, %c0_i32 : i32
    %1 = arith.extui %0 : i1 to i32
    %c0_i32_0 = arith.constant 0 : i32
    %2 = arith.cmpi ne, %1, %c0_i32_0 : i32
    scf.if %2 {
      %cst_6 = arith.constant 0.000000e+00 : f32
      %10 = vector.broadcast %cst_6 : f32 to vector<1x1024xf32>
      %c0_7 = arith.constant 0 : index
      %c0_8 = arith.constant 0 : index
      %11 = vector.load %arg2[%c0_7, %c0_8] : memref<1x1024xf32, #tpu.memory_space<vmem>>, vector<1x1024xf32>
      tpu.vector_store %arg2[%c0_7, %c0_8], %10 {strides = array<i32>} : memref<1x1024xf32, #tpu.memory_space<vmem>>, vector<1x1024xf32>,
    } else {
    }
    %c0 = arith.constant 0 : index
    %c0_1 = arith.constant 0 : index
    %3 = vector.load %arg2[%c0, %c0_1] : memref<1x1024xf32, #tpu.memory_space<vmem>>, vector<1x1024xf32>
    %c0_2 = arith.constant 0 : index
    %c0_3 = arith.constant 0 : index
    %4 = vector.load %arg1[%c0_2, %c0_3] : memref<8x1024xf32, #tpu.memory_space<vmem>>, vector<8x1024xf32>
    %5 = math.absf %4 : vector<8x1024xf32>
    %cst = arith.constant dense<0xFF800000> : vector<1024xf32>
    %6 = vector.multi_reduction <maximumf>, %5, %cst [0] : vector<8x1024xf32> to vector<1024xf32>
    %7 = vector.shape_cast %6 : vector<1024xf32> to vector<1x1024xf32>
    %8 = arith.maximumf %3, %7 : vector<1x1024xf32>
    %c0_4 = arith.constant 0 : index
    %c0_5 = arith.constant 0 : index
    %9 = vector.load %arg2[%c0_4, %c0_5] : memref<1x1024xf32, #tpu.memory_space<vmem>>, vector<1x1024xf32>
    tpu.vector_store %arg2[%c0_4, %c0_5], %8 {strides = array<i32>} : memref<1x1024xf32, #tpu.memory_space<vmem>>, vector<1x1024xf32>,
    return
  }
  func.func @transform_0(%arg0: i32) -> (i32, i32) {
    %c0_i32 = arith.constant 0 : i32
    %c0_i32_0 = arith.constant 0 : i32
    return %arg0, %c0_i32 : i32, i32
  }
  func.func @transform_1(%arg0: i32) -> (i32, i32) {
    %c0_i32 = arith.constant 0 : i32
    %c0_i32_0 = arith.constant 0 : i32
    %c0_i32_1 = arith.constant 0 : i32
    return %c0_i32, %c0_i32_0 : i32, i32
  }
}

</mosaic_0001>

<bundles_post_ra>
// kernel: _pallas_abs_max.1
= control target key start
LH: loop header
LB: loop body
LE: loop exit
PB: predicated region body
PF: predicated region fallthrough
CT: control target
= control target key end

     0   :  { %v93_v0 = vlaneseq  ;;  %v144_v4 = vmov 1966171168   ;;  %s185_s0 = inlined_call_operand.vmem [shape: f32[8,1024], index: 0, kind: input, shape index: {}]   ;;  %s186_s1 = inlined_call_operand.vmem [shape: f32[1,1024], index: 1, kind: output, shape index: {}]  }
   0x1   :  { %v14_v1 = vld [vmem:[%s185_s0] sm:$0xff]  ;;  %v15_v2 = vld [vmem:[%s185_s0 + $0x8] sm:$0xff]  ;;  %v16_v3 = vld [vmem:[%s185_s0 + $0x10] sm:$0xff]  ;;  %v164_v5 = vunpack.c.l.s4 %v144_v4 }
   0x2   :  { %v17_v6 = vld [vmem:[%s185_s0 + $0x18] sm:$0xff]  ;;  %v18_v7 = vld [vmem:[%s185_s0 + $0x20] sm:$0xff]  ;;  %v19_v8 = vld [vmem:[%s185_s0 + $0x28] sm:$0xff]  ;;  %v22_v9 = vand.u32 2147483647, %v14_v1  ;;  %v94_v10 = vshrl.u32 %v93_v0, 7 }
   0x3   :  { %v20_v11 = vld [vmem:[%s185_s0 + $0x30] sm:$0xff]  ;;  %v21_v12 = vld [vmem:[%s185_s0 + $0x38] sm:$0xff]  ;;  %v23_v13 = vand.u32 2147483647, %v15_v2  ;;  %v24_v14 = vand.u32 2147483647, %v16_v3  ;;  %v92_v18 = vunpack.c.0.s8 %v164_v5 }
   0x4   :  { %v25_v15 = vand.u32 2147483647, %v17_v6  ;;  %v26_v16 = vand.u32 2147483647, %v18_v7  ;;  %v27_v17 = vand.u32 2147483647, %v19_v8 }
   0x5   :  { %v28_v19 = vand.u32 2147483647, %v20_v11  ;;  %v29_v20 = vand.u32 2147483647, %v21_v12  ;;  %v30_v21 = vrot.slane %v22_v9, 4  ;;  %v36_v22 = vrot.slane %v23_v13, 4 }
   0x6   :  { %v42_v23 = vrot.slane %v24_v14, 4  ;;  %v48_v24 = vrot.slane %v25_v15, 4  ;;  %v54_v25 = vrot.slane %v26_v16, 4  ;;  %v60_v26 = vrot.slane %v27_v17, 4 }
   0x7   :  { %v31_v27 = vmax.f32 %v22_v9, %v30_v21  ;;  %v37_v28 = vmax.f32 %v23_v13, %v36_v22  ;;  %v66_v29 = vrot.slane %v28_v19, 4  ;;  %v72_v30 = vrot.slane %v29_v20, 4 }
   0x8   :  { %v43_v31 = vmax.f32 %v24_v14, %v42_v23  ;;  %v49_v32 = vmax.f32 %v25_v15, %v48_v24  ;;  %v55_v33 = vmax.f32 %v26_v16, %v54_v25  ;;  %v61_v34 = vmax.f32 %v27_v17, %v60_v26 }
   0x9   :  { %v32_v35 = vrot.slane %v31_v27, 2  ;;  %v38_v36 = vrot.slane %v37_v28, 2  ;;  %v67_v37 = vmax.f32 %v28_v19, %v66_v29  ;;  %v73_v38 = vmax.f32 %v29_v20, %v72_v30 }
   0xa   :  { %v44_v39 = vrot.slane %v43_v31, 2  ;;  %v50_v40 = vrot.slane %v49_v32, 2  ;;  %v56_v41 = vrot.slane %v55_v33, 2  ;;  %v62_v42 = vrot.slane %v61_v34, 2 }
   0xb   :  { %v33_v43 = vmax.f32 %v31_v27, %v32_v35  ;;  %v39_v44 = vmax.f32 %v37_v28, %v38_v36  ;;  %v68_v45 = vrot.slane %v67_v37, 2  ;;  %v74_v46 = vrot.slane %v73_v38, 2 }
   0xc   :  { %v45_v47 = vmax.f32 %v43_v31, %v44_v39  ;;  %v51_v48 = vmax.f32 %v49_v32, %v50_v40  ;;  %v57_v49 = vmax.f32 %v55_v33, %v56_v41  ;;  %v63_v50 = vmax.f32 %v61_v34, %v62_v42 }
   0xd   :  { %v34_v51 = vrot.slane %v33_v43, 1  ;;  %v40_v52 = vrot.slane %v39_v44, 1  ;;  %v69_v53 = vmax.f32 %v67_v37, %v68_v45  ;;  %v75_v54 = vmax.f32 %v73_v38, %v74_v46 }
   0xe   :  { %v46_v55 = vrot.slane %v45_v47, 1  ;;  %v52_v56 = vrot.slane %v51_v48, 1  ;;  %v58_v57 = vrot.slane %v57_v49, 1  ;;  %v64_v58 = vrot.slane %v63_v50, 1 }
   0xf   :  { %v35_v59 = vmax.f32 %v33_v43, %v34_v51  ;;  %v41_v60 = vmax.f32 %v39_v44, %v40_v52  ;;  %v70_v61 = vrot.slane %v69_v53, 1  ;;  %v76_v62 = vrot.slane %v75_v54, 1 }
  0x10   :  { %v47_v63 = vmax.f32 %v45_v47, %v46_v55  ;;  %v53_v0 = vmax.f32 %v51_v48, %v52_v56  ;;  %v59_v1 = vmax.f32 %v57_v49, %v58_v57  ;;  %v65_v2 = vmax.f32 %v63_v50, %v64_v58 }
  0x11   :  { %v71_v3 = vmax.f32 %v69_v53, %v70_v61  ;;  %v77_v4 = vmax.f32 %v75_v54, %v76_v62  ;;  %v86_v5 = vcombine.low %v35_v59, %v41_v60  ;;  %v95_v6 = vsub.s32 %v92_v18, %v94_v10 }
  0x12   :  { %v87_v7 = vcombine.low %v47_v63, %v53_v0  ;;  %v88_v8 = vcombine.low %v59_v1, %v65_v2 }
  0x13   :  { %v89_v9 = vcombine.low %v71_v3, %v77_v4  ;;  %v96_v11 = vrot.slane %v86_v5, %v95_v6 }
  0x14   :  { %v103_v12 = vrot.slane %v87_v7, %v95_v6  ;;  %v110_v13 = vrot.slane %v88_v8, %v95_v6 }
  0x15   :  { %v117_v14 = vrot.slane %v89_v9, %v95_v6 }
  0x16   :  { %v118_v15 = vcombine.low %v96_v11, %v103_v12 }
  0x17   :  { %v119_v16 = vcombine.low %v110_v13, %v117_v14 }
  0x18   :  { %v126_v17 = vrot.slane %v118_v15, %v95_v6 }
  0x19   :  { %v133_v19 = vrot.slane %v119_v16, %v95_v6 }
  0x1b   :  { %v134_v20 = vcombine.low %v126_v17, %v133_v19 }
  0x1d   :  { %v136_v21 = vmax.f32 %v134_v20, 0.0 }
  0x1f   :  { %137 = vst [vmem:[%s186_s1] sm:$0xff] %v136_v21 }

</bundles_post_ra>
